<compile_context>
chip_gen: v5e
topology: v5e:2x2
jax: 0.10.0
libtpu: 0.0.40
codegen_flags: <defaults>
</compile_context>

<pallas_src>
import functools

import jax
import jax.numpy as jnp
from jax import lax
from jax.experimental import pallas as pl
from jax.experimental.pallas import tpu as pltpu

EPS = 1e-12  # clamp used by euclidean_dist before sqrt


def _round_up(x, m):
    return ((x + m - 1) // m) * m


def _triplet_kernel(q_ref, p_ref, n_ref, qq_ref, pp_ref, nn_ref, out_ref, *, margin):
    # Tiles: q (TM, D), p/n (TN, D), qq (TM, 1), pp/nn (1, TN), out (TM, TN).
    q = q_ref[...]
    p = p_ref[...]
    n = n_ref[...]

    # Contract D vs D directly on the MXU (no transpose of p / n).
    dn = (((1,), (1,)), ((), ()))
    xy_p = lax.dot_general(q, p, dn, preferred_element_type=jnp.float32)  # (TM, TN)
    xy_n = lax.dot_general(q, n, dn, preferred_element_type=jnp.float32)  # (TM, TN)

    qq = qq_ref[...]  # (TM, 1) f32
    pp = pp_ref[...]  # (1, TN) f32
    nn = nn_ref[...]  # (1, TN) f32

    s_qp = qq + pp - 2.0 * xy_p
    s_qn = qq + nn - 2.0 * xy_n

    out_ref[...] = (
        jnp.sqrt(jnp.maximum(s_qp, EPS))
        + margin
        - jnp.sqrt(jnp.maximum(s_qn, EPS))
    ).astype(out_ref.dtype)


def zznet_triplet_forward(des_q, des_p, des_n, margin=0.5, *, tm=256, tn=256):
    """Pallas implementation of zznet_triplet.forward.

    des_q: (I, D), des_p: (J, D), des_n: (K, D) with K == J.
    Returns the (I, J) matrix ||q-p|| + margin - ||q-n||.
    """
    I, D = des_q.shape
    J, Dp = des_p.shape
    K, Dn = des_n.shape
    assert D == Dp == Dn, "feature dims must match"
    assert K == J, "broadcast in triplet loss requires j == k"

    # --- tile selection (128-aligned lanes; shrink for tiny inputs) ---
    TM = min(tm, _round_up(I, 8))
    TN = min(tn, _round_up(J, 128))
    I_pad = _round_up(I, TM)
    J_pad = _round_up(J, TN)
    D_pad = _round_up(D, 128)

    # --- zero-pad (zeros don't change dot products or squared norms) ---
    def pad2(x, rows, cols):
        return jnp.pad(x, ((0, rows - x.shape[0]), (0, cols - x.shape[1])))

    qp = pad2(des_q, I_pad, D_pad)
    pp_ = pad2(des_p, J_pad, D_pad)
    np_ = pad2(des_n, J_pad, D_pad)

    # --- squared norms precomputed once (f32), lane-dense for p/n ---
    qf = qp.astype(jnp.float32)
    pf = pp_.astype(jnp.float32)
    nf = np_.astype(jnp.float32)
    qq = jnp.sum(qf * qf, axis=-1, keepdims=True)            # (I_pad, 1)
    pn = jnp.sum(pf * pf, axis=-1, keepdims=True).T           # (1, J_pad)
    nn = jnp.sum(nf * nf, axis=-1, keepdims=True).T           # (1, J_pad)

    grid = (I_pad // TM, J_pad // TN)

    kernel = functools.partial(_triplet_kernel, margin=float(margin))

    out = pl.pallas_call(
        kernel,
        out_shape=jax.ShapeDtypeStruct((I_pad, J_pad), jnp.float32),
        grid_spec=pltpu.PrefetchScalarGridSpec(
            num_scalar_prefetch=0,
            grid=grid,
            in_specs=[
                pl.BlockSpec((TM, D_pad), lambda i, j: (i, 0)),   # q
                pl.BlockSpec((TN, D_pad), lambda i, j: (j, 0)),   # p
                pl.BlockSpec((TN, D_pad), lambda i, j: (j, 0)),   # n
                pl.BlockSpec((TM, 1), lambda i, j: (i, 0)),       # ||q||^2
                pl.BlockSpec((1, TN), lambda i, j: (0, j)),       # ||p||^2
                pl.BlockSpec((1, TN), lambda i, j: (0, j)),       # ||n||^2
            ],
            out_specs=pl.BlockSpec((TM, TN), lambda i, j: (i, j)),
        ),
        compiler_params=pltpu.CompilerParams(
            dimension_semantics=("parallel", "parallel"),
            vmem_limit_bytes=48 * 1024 * 1024,
        ),
    )(qp, pp_, np_, qq, pn, nn)

    return out[:I, :J]


def _reference(des_q, des_p, des_n, margin=0.5):
    def dist(x, y):
        x = x.astype(jnp.float32)
        y = y.astype(jnp.float32)
        xx = jnp.sum(x * x, axis=-1, keepdims=True)
        yy = jnp.sum(y * y, axis=-1, keepdims=True).T
        d2 = jnp.maximum(xx + yy - 2.0 * x @ y.T, EPS)
        return jnp.sqrt(d2)

    return dist(des_q, des_p) + margin - dist(des_q, des_n)


if __name__ == "__main__":
    key = jax.random.PRNGKey(0)

    # Small shape consistent with the module (i, d) / (j, d) / (k, d), k == j.
    kq, kp, kn = jax.random.split(key, 3)
    I, J, K, D = 8, 8, 8, 32
    des_q = jax.random.normal(kq, (I, D), dtype=jnp.float32)
    des_p = jax.random.normal(kp, (J, D), dtype=jnp.float32)
    des_n = jax.random.normal(kn, (K, D), dtype=jnp.float32)

    out = zznet_triplet_forward(des_q, des_p, des_n, margin=0.5)
    out = jax.block_until_ready(out)
    ref = _reference(des_q, des_p, des_n, margin=0.5)
    assert out.shape == (I, J)
    assert jnp.allclose(out, ref, atol=1e-4, rtol=1e-4), "mismatch vs reference (small)"

    # Medium, non-aligned shape to exercise the 2-D grid + padding path.
    kq2, kp2, kn2 = jax.random.split(jax.random.PRNGKey(1), 3)
    I2, J2, D2 = 300, 200, 96
    q2 = jax.random.normal(kq2, (I2, D2), dtype=jnp.float32)
    p2 = jax.random.normal(kp2, (J2, D2), dtype=jnp.float32)
    n2 = jax.random.normal(kn2, (J2, D2), dtype=jnp.float32)

    out2 = jax.block_until_ready(zznet_triplet_forward(q2, p2, n2, margin=0.5))
    ref2 = _reference(q2, p2, n2, margin=0.5)
    assert out2.shape == (I2, J2)
    assert jnp.allclose(out2, ref2, atol=1e-4, rtol=1e-4), "mismatch vs reference (medium)"

    print("KERNEL_OK")
</pallas_src>

<mosaic_0001>
module attributes {stable_mosaic.version = 11 : i64} {
  func.func @_triplet_kernel(%arg0: i32, %arg1: i32, %arg2: memref<8x128xf32, #tpu.memory_space<vmem>>, %arg3: memref<128x128xf32, #tpu.memory_space<vmem>>, %arg4: memref<128x128xf32, #tpu.memory_space<vmem>>, %arg5: memref<8x1xf32, #tpu.memory_space<vmem>>, %arg6: memref<1x128xf32, #tpu.memory_space<vmem>>, %arg7: memref<1x128xf32, #tpu.memory_space<vmem>>, %arg8: memref<8x128xf32, #tpu.memory_space<vmem>>) attributes {dimension_semantics = [#tpu.dimension_semantics<parallel>, #tpu.dimension_semantics<parallel>], iteration_bounds = array<i64: 1, 1>, scalar_prefetch = 0 : i64, scratch_operands = 0 : i64, tpu.core_type = #tpu.core_type<tc>, window_params = [{transform_indices = @transform_0, window_bounds = array<i64: 8, 128>}, {transform_indices = @transform_1, window_bounds = array<i64: 128, 128>}, {transform_indices = @transform_2, window_bounds = array<i64: 128, 128>}, {transform_indices = @transform_3, window_bounds = array<i64: 8, 1>}, {transform_indices = @transform_4, window_bounds = array<i64: 1, 128>}, {transform_indices = @transform_5, window_bounds = array<i64: 1, 128>}, {transform_indices = @transform_6, window_bounds = array<i64: 8, 128>}]} {
    %c0 = arith.constant 0 : index
    %c0_0 = arith.constant 0 : index
    %0 = vector.load %arg2[%c0, %c0_0] : memref<8x128xf32, #tpu.memory_space<vmem>>, vector<8x128xf32>
    %c0_1 = arith.constant 0 : index
    %c0_2 = arith.constant 0 : index
    %1 = vector.load %arg3[%c0_1, %c0_2] : memref<128x128xf32, #tpu.memory_space<vmem>>, vector<128x128xf32>
    %c0_3 = arith.constant 0 : index
    %c0_4 = arith.constant 0 : index
    %2 = vector.load %arg4[%c0_3, %c0_4] : memref<128x128xf32, #tpu.memory_space<vmem>>, vector<128x128xf32>
    %cst = arith.constant dense<0.000000e+00> : vector<8x128xf32>
    %3 = tpu.matmul %0, %1, %cst {dimension_numbers = #tpu.dot_dimension_numbers<[1], [1], [0], [0], [0, 0, 1, 0], [], []>} : vector<8x128xf32>, vector<128x128xf32>, vector<8x128xf32> -> vector<8x128xf32>
    %cst_5 = arith.constant dense<0.000000e+00> : vector<8x128xf32>
    %4 = tpu.matmul %0, %2, %cst_5 {dimension_numbers = #tpu.dot_dimension_numbers<[1], [1], [0], [0], [0, 0, 1, 0], [], []>} : vector<8x128xf32>, vector<128x128xf32>, vector<8x128xf32> -> vector<8x128xf32>
    %c0_6 = arith.constant 0 : index
    %c0_7 = arith.constant 0 : index
    %5 = vector.load %arg5[%c0_6, %c0_7] : memref<8x1xf32, #tpu.memory_space<vmem>>, vector<8x1xf32>
    %c0_8 = arith.constant 0 : index
    %c0_9 = arith.constant 0 : index
    %6 = vector.load %arg6[%c0_8, %c0_9] : memref<1x128xf32, #tpu.memory_space<vmem>>, vector<1x128xf32>
    %c0_10 = arith.constant 0 : index
    %c0_11 = arith.constant 0 : index
    %7 = vector.load %arg7[%c0_10, %c0_11] : memref<1x128xf32, #tpu.memory_space<vmem>>, vector<1x128xf32>
    %8 = vector.broadcast %5 : vector<8x1xf32> to vector<8x128xf32>
    %9 = vector.broadcast %6 : vector<1x128xf32> to vector<8x128xf32>
    %10 = arith.addf %8, %9 : vector<8x128xf32>
    %cst_12 = arith.constant 2.000000e+00 : f32
    %11 = vector.broadcast %cst_12 : f32 to vector<8x128xf32>
    %12 = arith.mulf %11, %3 : vector<8x128xf32>
    %13 = arith.subf %10, %12 : vector<8x128xf32>
    %14 = vector.broadcast %5 : vector<8x1xf32> to vector<8x128xf32>
    %15 = vector.broadcast %7 : vector<1x128xf32> to vector<8x128xf32>
    %16 = arith.addf %14, %15 : vector<8x128xf32>
    %cst_13 = arith.constant 2.000000e+00 : f32
    %17 = vector.broadcast %cst_13 : f32 to vector<8x128xf32>
    %18 = arith.mulf %17, %4 : vector<8x128xf32>
    %19 = arith.subf %16, %18 : vector<8x128xf32>
    %cst_14 = arith.constant 9.99999996E-13 : f32
    %20 = vector.broadcast %cst_14 : f32 to vector<8x128xf32>
    %21 = arith.maximumf %13, %20 : vector<8x128xf32>
    %22 = math.sqrt %21 : vector<8x128xf32>
    %cst_15 = arith.constant 5.000000e-01 : f32
    %23 = vector.broadcast %cst_15 : f32 to vector<8x128xf32>
    %24 = arith.addf %22, %23 : vector<8x128xf32>
    %cst_16 = arith.constant 9.99999996E-13 : f32
    %25 = vector.broadcast %cst_16 : f32 to vector<8x128xf32>
    %26 = arith.maximumf %19, %25 : vector<8x128xf32>
    %27 = math.sqrt %26 : vector<8x128xf32>
    %28 = arith.subf %24, %27 : vector<8x128xf32>
    %c0_17 = arith.constant 0 : index
    %c0_18 = arith.constant 0 : index
    %29 = vector.load %arg8[%c0_17, %c0_18] : memref<8x128xf32, #tpu.memory_space<vmem>>, vector<8x128xf32>
    tpu.vector_store %arg8[%c0_17, %c0_18], %28 {strides = array<i32>} : memref<8x128xf32, #tpu.memory_space<vmem>>, vector<8x128xf32>,
    return
  }
  func.func @transform_0(%arg0: i32, %arg1: i32) -> (i32, i32) {
    %c0_i32 = arith.constant 0 : i32
    %c0_i32_0 = arith.constant 0 : i32
    return %arg0, %c0_i32 : i32, i32
  }
  func.func @transform_1(%arg0: i32, %arg1: i32) -> (i32, i32) {
    %c0_i32 = arith.constant 0 : i32
    %c0_i32_0 = arith.constant 0 : i32
    return %arg1, %c0_i32 : i32, i32
  }
  func.func @transform_2(%arg0: i32, %arg1: i32) -> (i32, i32) {
    %c0_i32 = arith.constant 0 : i32
    %c0_i32_0 = arith.constant 0 : i32
    return %arg1, %c0_i32 : i32, i32
  }
  func.func @transform_3(%arg0: i32, %arg1: i32) -> (i32, i32) {
    %c0_i32 = arith.constant 0 : i32
    %c0_i32_0 = arith.constant 0 : i32
    return %arg0, %c0_i32 : i32, i32
  }
  func.func @transform_4(%arg0: i32, %arg1: i32) -> (i32, i32) {
    %c0_i32 = arith.constant 0 : i32
    %c0_i32_0 = arith.constant 0 : i32
    return %c0_i32, %arg1 : i32, i32
  }
  func.func @transform_5(%arg0: i32, %arg1: i32) -> (i32, i32) {
    %c0_i32 = arith.constant 0 : i32
    %c0_i32_0 = arith.constant 0 : i32
    return %c0_i32, %arg1 : i32, i32
  }
  func.func @transform_6(%arg0: i32, %arg1: i32) -> (i32, i32) {
    %c0_i32 = arith.constant 0 : i32
    return %arg0, %arg1 : i32, i32
  }
}

</mosaic_0001>

<bundles_post_ra>
// kernel: tpu_custom_call.1
= control target key start
LH: loop header
LB: loop body
LE: loop exit
PB: predicated region body
PF: predicated region fallthrough
CT: control target
= control target key end

     0   :  { %11 = vsyncpa [#allocation3], 0  ;;  %s349_s0 = inlined_call_operand.vmem [shape: f32[8,128], index: 0, kind: input, shape index: {}]   ;;  %s350_s1 = inlined_call_operand.hbm [shape: f32[128,128], index: 1, kind: input, shape index: {}]   ;;  %s351_s2 = inlined_call_operand.hbm [shape: f32[128,128], index: 2, kind: input, shape index: {}]   ;;  %s352_s3 = inlined_call_operand.vmem [shape: f32[8,1], index: 3, kind: input, shape index: {}]   ;;  %s353_s4 = inlined_call_operand.vmem [shape: f32[1,128], index: 4, kind: input, shape index: {}]   ;;  %s354_s5 = inlined_call_operand.vmem [shape: f32[1,128], index: 5, kind: input, shape index: {}]   ;;  %s355_s6 = inlined_call_operand.hbm [shape: f32[8,128], index: 6, kind: output, shape index: {}]  }
   0x1   :  { %12 = vsyncpa [#allocation6], 0 }
   0x2   :  { %13 = vsyncpa [#allocation4], 0  ;;  %s20_s23 = sshll.u32 %s350_s1, 4  ;;  %s287_s24 = smov [#allocation2]   ;;  %s21_s23 = int_to_ptr.hbm [resolvable:$true] %s20_s23 }
   0x3   :  { %s22_s25 = sshll.u32 %s287_s24, 4  ;;  %s33_s28 = sshll.u32 %s351_s2, 4  ;;  %s23_s25 = int_to_ptr.vmem [resolvable:$true] %s22_s25  ;;  %s34_s28 = int_to_ptr.hbm [resolvable:$true] %s33_s28 }
   0x4   :  { %s288_s29 = smov 128   ;;  %s289_s30 = smov 8  }
   0x5   :  { %28 = dma.hbm_to_vmem [thread:$0]  %s21_s23, 2048, %s23_s25, [#allocation3], %s288_s29, %s288_s29, %s289_s30  }
   0x6   :  { %s290_s7 = smov [#allocation5]  }
   0x7   :  { %s35_s8 = sshll.u32 %s290_s7, 4  ;;  %s36_s8 = int_to_ptr.vmem [resolvable:$true] %s35_s8 }
   0x8   :  { %41 = dma.hbm_to_vmem [thread:$0]  %s34_s28, 2048, %s36_s8, [#allocation6], %s288_s29, %s288_s29, %s289_s30  }
   0x9   :  { %281 = dma.done.wait [#allocation3], 2048  }
   0xa   :  { %282 = vsyncadd [#allocation3], 4294965248 }
   0xb   :  { %283 = dma.done.wait [#allocation6], 2048  }
   0xc   :  { %284 = vsyncadd [#allocation6], 4294965248  ;;  %v72_v0 = vld [vmem:[#allocation2 + $0x78] sm:$0xff]  ;;  %v71_v2 = vld [vmem:[#allocation2 + $0x70] sm:$0xff]  ;;  %v291_v21 = vmov 0   ;;  %s185_s15 = sshll.u32 %s355_s6, 4  ;;  %s186_s15 = int_to_ptr.hbm [resolvable:$true] %s185_s15 }
   0xd   :  { %v88_v1 = vld [vmem:[#allocation5 + $0x78] sm:$0xff]  ;;  %89 = vmatpush.xpose.msra.mxu0 %v72_v0  ;;  %v87_v3 = vld [vmem:[#allocation5 + $0x70] sm:$0xff]  ;;  %v70_v4 = vld [vmem:[#allocation2 + $0x68] sm:$0xff]  ;;  %202 = vset.pattern.permute.xlu0 %v291_v21 }
   0xe   :  { %109 = vmatpush.xpose.msra.mxu1 %v88_v1  ;;  %v86_v5 = vld [vmem:[#allocation5 + $0x68] sm:$0xff]  ;;  %v69_v6 = vld [vmem:[#allocation2 + $0x60] sm:$0xff]  ;;  %v68_v8 = vld [vmem:[#allocation2 + $0x58] sm:$0xff] }
   0xf   :  { %v85_v7 = vld [vmem:[#allocation5 + $0x60] sm:$0xff]  ;;  %v84_v9 = vld [vmem:[#allocation5 + $0x58] sm:$0xff]  ;;  %v67_v10 = vld [vmem:[#allocation2 + $0x50] sm:$0xff] }
  0x10   :  { %v83_v11 = vld [vmem:[#allocation5 + $0x50] sm:$0xff]  ;;  %v66_v12 = vld [vmem:[#allocation2 + $0x48] sm:$0xff]  ;;  %v65_v14 = vld [vmem:[#allocation2 + $0x40] sm:$0xff] }
  0x11   :  { %90 = vmatpush.xpose.msra.mxu0 %v71_v2  ;;  %v82_v13 = vld [vmem:[#allocation5 + $0x48] sm:$0xff]  ;;  %v81_v15 = vld [vmem:[#allocation5 + $0x40] sm:$0xff]  ;;  %v64_v16 = vld [vmem:[#allocation2 + $0x38] sm:$0xff] }
  0x12   :  { %110 = vmatpush.xpose.msra.mxu1 %v87_v3  ;;  %v80_v17 = vld [vmem:[#allocation5 + $0x38] sm:$0xff]  ;;  %v129_v18 = vld [vmem:[%s352_s3] sm:$0xff]  ;;  %v63_v19 = vld [vmem:[#allocation2 + $0x30] sm:$0xff] }
  0x13   :  { %v79_v20 = vld [vmem:[#allocation5 + $0x30] sm:$0xff]  ;;  %134 = vperm.xlu0 %202, %v129_v18   ;;  %v62_v22 = vld [vmem:[#allocation2 + $0x28] sm:$0xff]  ;;  %v61_v24 = vld [vmem:[#allocation2 + $0x20] sm:$0xff] }
  0x14   :  { %v78_v23 = vld [vmem:[#allocation5 + $0x28] sm:$0xff]  ;;  %v77_v25 = vld [vmem:[#allocation5 + $0x20] sm:$0xff]  ;;  %v60_v26 = vld [vmem:[#allocation2 + $0x18] sm:$0xff] }
  0x15   :  { %91 = vmatpush.xpose.msra.mxu0 %v70_v4  ;;  %v76_v27 = vld [vmem:[#allocation5 + $0x18] sm:$0xff]  ;;  %v59_v28 = vld [vmem:[#allocation2 + $0x10] sm:$0xff]  ;;  %v58_v30 = vld [vmem:[#allocation2 + $0x8] sm:$0xff] }
  0x16   :  { %111 = vmatpush.xpose.msra.mxu1 %v86_v5  ;;  %v75_v29 = vld [vmem:[#allocation5 + $0x10] sm:$0xff]  ;;  %v74_v31 = vld [vmem:[#allocation5 + $0x8] sm:$0xff]  ;;  %v57_v32 = vld [vmem:[#allocation2] sm:$0xff] }
  0x17   :  { %v73_v33 = vld [vmem:[#allocation5] sm:$0xff] }
  0x18   :  { %v56_v34 = vld [vmem:[%s349_s0] sm:$0xff]  ;;  %s292_s0 = smov [#allocation7]  }
  0x19   :  { %92 = vmatpush.xpose.msra.mxu0 %v69_v6  ;;  %v203_v35 = vld [vmem:[%s353_s4] ss:$0 sm:$0xff]  ;;  %s183_s4 = sshll.u32 %s292_s0, 4  ;;  %s184_s4 = int_to_ptr.vmem [resolvable:$true] %s183_s4 }
  0x1a   :  { %112 = vmatpush.xpose.msra.mxu1 %v85_v7  ;;  %v204_v36 = vld [vmem:[%s354_s5] ss:$0 sm:$0xff] }
  0x1d   :  { %93 = vmatpush.xpose.msra.mxu0 %v68_v8 }
  0x1e   :  { %113 = vmatpush.xpose.msra.mxu1 %v84_v9 }
  0x21   :  { %94 = vmatpush.xpose.msra.mxu0 %v67_v10 }
  0x22   :  { %114 = vmatpush.xpose.msra.mxu1 %v83_v11 }
  0x25   :  { %95 = vmatpush.xpose.msra.mxu0 %v66_v12 }
  0x26   :  { %115 = vmatpush.xpose.msra.mxu1 %v82_v13 }
  0x29   :  { %96 = vmatpush.xpose.msra.mxu0 %v65_v14 }
  0x2a   :  { %116 = vmatpush.xpose.msra.mxu1 %v81_v15 }
  0x2d   :  { %97 = vmatpush.xpose.msra.mxu0 %v64_v16 }
  0x2e   :  { %117 = vmatpush.xpose.msra.mxu1 %v80_v17 }
  0x31   :  { %98 = vmatpush.xpose.msra.mxu0 %v63_v19 }
  0x32   :  { %118 = vmatpush.xpose.msra.mxu1 %v79_v20 }
  0x35   :  { %99 = vmatpush.xpose.msra.mxu0 %v62_v22 }
  0x36   :  { %119 = vmatpush.xpose.msra.mxu1 %v78_v23 }
  0x39   :  { %100 = vmatpush.xpose.msra.mxu0 %v61_v24 }
  0x3a   :  { %120 = vmatpush.xpose.msra.mxu1 %v77_v25 }
  0x3d   :  { %101 = vmatpush.xpose.msra.mxu0 %v60_v26 }
  0x3e   :  { %121 = vmatpush.xpose.msra.mxu1 %v76_v27 }
  0x41   :  { %102 = vmatpush.xpose.msra.mxu0 %v59_v28 }
  0x42   :  { %122 = vmatpush.xpose.msra.mxu1 %v75_v29 }
  0x45   :  { %103 = vmatpush.xpose.msra.mxu0 %v58_v30 }
  0x46   :  { %123 = vmatpush.xpose.msra.mxu1 %v74_v31 }
  0x49   :  { %104 = vmatpush.xpose.msra.mxu0 %v57_v32 }
  0x4a   :  { %124 = vmatpush.xpose.msra.mxu1 %v73_v33 }
  0x4c   :  { %105 = vmatmul.f32.vlgmr.msra.gmra.mxu0 %v56_v34 }
  0x4d   :  { %125 = vmatmul.f32.vlgmr.msra.gmra.mxu1 %v56_v34 }
  0x85   :  { %v135_v37 = vpop.permute.xlu0 %134 }
  0x86   :  { %v140_v38 = vadd.f32 %v203_v35, %v135_v37  ;;  %v146_v39 = vadd.f32 %v204_v36, %v135_v37 }
  0xc9   :  { %v106_v40 = vpop.f32.mrf.mxu0 }
  0xca   :  { %v126_v41 = vpop.f32.mrf.mxu1  ;;  %v141_v42 = vmul.f32 2.0, %v106_v40 }
  0xcb   :  { %v147_v43 = vmul.f32 2.0, %v126_v41 }
  0xcc   :  { %v142_v44 = vsub.f32 %v140_v38, %v141_v42 }
  0xcd   :  { %v148_v45 = vsub.f32 %v146_v39, %v147_v43 }
  0xce   :  { %v149_v46 = vmax.f32 %v142_v44, 1e-12 }
  0xcf   :  { %v163_v47 = vmax.f32 %v148_v45, 1e-12 }
  0xd0   :  { %205 = vrsqrt.f32 %v149_v46  ;;  %vm157_vm0 = vcmp.eq.f32.partialorder %v149_v46, inf  ;;  %v160_v61 = vand.u32 2147483648, %v149_v46  ;;  %vm159_vm1 = vcmp.eq.f32.partialorder %v149_v46, 0.0 }
  0xd1   :  { %207 = vrsqrt.f32 %v163_v47  ;;  %vm171_vm2 = vcmp.eq.f32.partialorder %v163_v47, inf  ;;  %v174_v2 = vand.u32 2147483648, %v163_v47  ;;  %vm173_vm3 = vcmp.eq.f32.partialorder %v163_v47, 0.0 }
  0xd6   :  { %v206_v48 = vpop.eup %205 }
  0xd7   :  { %v208_v49 = vpop.eup %207  ;;  %v151_v50 = vmul.f32 %v206_v48, %v149_v46 }
  0xd8   :  { %v165_v51 = vmul.f32 %v208_v49, %v163_v47 }
  0xd9   :  { %v152_v52 = vmul.f32 %v206_v48, %v151_v50 }
  0xda   :  { %v166_v53 = vmul.f32 %v208_v49, %v165_v51 }
  0xdb   :  { %v153_v54 = vmul.f32 0.5, %v152_v52 }
  0xdc   :  { %v167_v55 = vmul.f32 0.5, %v166_v53 }
  0xdd   :  { %v154_v56 = vsub.f32 1.5, %v153_v54 }
  0xde   :  { %v168_v57 = vsub.f32 1.5, %v167_v55 }
  0xdf   :  { %v155_v58 = vmul.f32 %v206_v48, %v154_v56 }
  0xe0   :  { %v169_v59 = vmul.f32 %v208_v49, %v168_v57 }
  0xe1   :  { %v156_v60 = vmul.f32 %v155_v58, %v149_v46 }
  0xe2   :  { %v170_v62 = vmul.f32 %v169_v59, %v163_v47 }
  0xe3   :  { %v158_v63 = vsel %vm157_vm0, %v149_v46, %v156_v60 }
  0xe4   :  { %v161_v0 = vsel %vm159_vm1, %v160_v61, %v158_v63  ;;  %v172_v1 = vsel %vm171_vm2, %v163_v47, %v170_v62 }
  0xe5   :  { %v162_v3 = vadd.f32 0.5, %v161_v0  ;;  %v175_v4 = vsel %vm173_vm3, %v174_v2, %v172_v1 }
  0xe7   :  { %v176_v5 = vsub.f32 %v162_v3, %v175_v4 }
  0xe9   :  { %177 = vst [vmem:[#allocation7] sm:$0xff] %v176_v5 }
  0xea   :  { %188 = dma.vmem_to_hbm [thread:$0]  %s184_s4, 128, %s186_s15, [#allocation4]  }
  0xeb   :  { %285 = dma.done.wait [#allocation4], 128  }
  0xec   :  { %286 = vsyncadd [#allocation4], 4294967168 }
  0xed   :  { %193 = vsyncpa [#allocation3], 1 }
  0xee   :  { %194 = vsyncpa [#allocation6], 1 }
  0xef   :  { %195 = vsyncpa [#allocation4], 1 }

</bundles_post_ra>
